<compile_context>
chip_gen: v7x
topology: tpu7x:2x2x1
jax: 0.10.0
libtpu: 0.0.40
codegen_flags: <defaults>
</compile_context>

<pallas_src>
import functools

import jax
import jax.numpy as jnp
from jax.experimental import pallas as pl
from jax.experimental.pallas import tpu as pltpu

IN_DIM = 157
HID_DIM = 32


def _round_up(x, m):
    return ((x + m - 1) // m) * m


def _device_defaults():
    """(default_batch_tile, vmem_limit_bytes, allow_core_parallel) per TPU generation."""
    kind = ""
    try:
        kind = jax.devices()[0].device_kind.lower()
    except Exception:  # pragma: no cover - defensive; backend should be TPU.
        pass
    if "v7" in kind:
        # v7x: 64 MiB physical VMEM per TC, 2 TCs -> core-parallel the batch axis.
        return 8192, 48 * 1024 * 1024, True
    if "v5" in kind:
        # v5e: keep well inside scoped VMEM; 2048-row f32 tiles ~ 10 MiB pipelined.
        return 2048, 32 * 1024 * 1024, False
    # v6e / unknown: ~20 MiB pipelined footprint at TB=4096 f32.
    return 4096, 48 * 1024 * 1024, False


def _ae_kernel(x_ref, we_ref, be_ref, wd_ref, bd_ref, enc_ref, dec_ref):
    # Encoder: MXU consumes x / W at their streamed dtype (f32 or bf16) and
    # accumulates in f32; bias-add + tanh stay in f32 (v5e-safe).
    h = jnp.dot(x_ref[...], we_ref[...], preferred_element_type=jnp.float32)
    h = jnp.tanh(h + be_ref[...])
    # (TB, 32) store is lane-sparse but its DMA is contiguous and the store slot
    # has slack under the HBM bottleneck -- keep it simple.
    enc_ref[...] = h.astype(enc_ref.dtype)

    # Decoder: cast h down to the matmul dtype (no-op for f32) so bf16 streaming
    # keeps the native bf16 MXU path; sigmoid in f32.
    d = jnp.dot(h.astype(wd_ref.dtype), wd_ref[...],
                preferred_element_type=jnp.float32)
    dec_ref[...] = jax.nn.sigmoid(d + bd_ref[...]).astype(dec_ref.dtype)


@functools.partial(jax.jit, static_argnames=("block_rows",))
def simple_ae_forward(x, w_enc, b_enc, w_dec, b_dec, *, block_rows=None):
    """SimpleAE forward.

    x: (B, 157). w_enc: (157, 32), b_enc: (1, 32), w_dec: (32, 157), b_dec: (1, 157).
    Returns (encoded (B, 32), decoded (B, 157)), matching SimpleAE.forward.

    Outputs follow x.dtype; MXU operands use x.dtype (cast x to bf16 at the call
    site to halve HBM traffic on this bandwidth-bound kernel -- expect ~1e-3-level
    deviations vs the f32 reference). Bias-add and activations are always f32.
    block_rows=None picks a generation-appropriate batch tile automatically.
    """
    B = x.shape[0]
    out_dtype = x.dtype
    mm_dtype = x.dtype                      # MXU input dtype follows the stream.
    w_enc = w_enc.astype(mm_dtype)
    w_dec = w_dec.astype(mm_dtype)
    b_enc = b_enc.astype(jnp.float32)
    b_dec = b_dec.astype(jnp.float32)

    tb_default, vmem_limit, allow_core_par = _device_defaults()
    tb_cap = tb_default if block_rows is None else block_rows

    # Batch tile: multiple of 8, at most the cap, no bigger than needed.
    tb = min(_round_up(max(tb_cap, 8), 8), _round_up(max(B, 1), 8))
    b_pad = _round_up(B, tb)
    if b_pad != B:
        x = jnp.pad(x, ((0, b_pad - B), (0, 0)))
    grid = (b_pad // tb,)

    batched = lambda feat: pl.BlockSpec((tb, feat), lambda i: (i, 0))
    resident = lambda shape: pl.BlockSpec(shape, lambda i: (0, 0))

    # Engage both v7x TensorCores only when each core gets several grid steps.
    if allow_core_par and grid[0] >= 8:
        dim_sem = (getattr(pltpu, "CORE_PARALLEL", "parallel"),)
    else:
        dim_sem = ("parallel",)

    act_bytes = jnp.dtype(out_dtype).itemsize
    w_bytes = jnp.dtype(mm_dtype).itemsize
    cost = pl.CostEstimate(
        flops=4 * b_pad * IN_DIM * HID_DIM,                      # two matmuls
        transcendentals=b_pad * (HID_DIM + IN_DIM),              # tanh + sigmoid
        bytes_accessed=(b_pad * (2 * IN_DIM + HID_DIM) * act_bytes
                        + 2 * IN_DIM * HID_DIM * w_bytes
                        + (IN_DIM + HID_DIM) * 4),
    )

    encoded, decoded = pl.pallas_call(
        _ae_kernel,
        grid=grid,
        in_specs=[
            batched(IN_DIM),                 # x        (tb, 157) streamed
            resident((IN_DIM, HID_DIM)),     # w_enc    resident in VMEM
            resident((1, HID_DIM)),          # b_enc    (f32)
            resident((HID_DIM, IN_DIM)),     # w_dec
            resident((1, IN_DIM)),           # b_dec    (f32)
        ],
        out_specs=(
            batched(HID_DIM),                # encoded  (tb, 32) streamed
            batched(IN_DIM),                 # decoded  (tb, 157) streamed
        ),
        out_shape=(
            jax.ShapeDtypeStruct((b_pad, HID_DIM), out_dtype),
            jax.ShapeDtypeStruct((b_pad, IN_DIM), out_dtype),
        ),
        compiler_params=pltpu.CompilerParams(
            dimension_semantics=dim_sem,
            vmem_limit_bytes=vmem_limit,
        ),
        cost_estimate=cost,
    )(x, w_enc, b_enc, w_dec, b_dec)

    if b_pad != B:
        encoded = encoded[:B]
        decoded = decoded[:B]
    return encoded, decoded


def init_params(key):
    """Deterministic init mimicking nn.Linear's uniform(-1/sqrt(fan_in), ...).

    Weights are stored already transposed to (in, out) so the kernel computes
    x @ W + b directly on the MXU."""
    k1, k2, k3, k4 = jax.random.split(key, 4)
    bound_enc = 1.0 / jnp.sqrt(jnp.float32(IN_DIM))
    bound_dec = 1.0 / jnp.sqrt(jnp.float32(HID_DIM))
    w_enc = jax.random.uniform(k1, (IN_DIM, HID_DIM), jnp.float32,
                               -bound_enc, bound_enc)
    b_enc = jax.random.uniform(k2, (1, HID_DIM), jnp.float32,
                               -bound_enc, bound_enc)
    w_dec = jax.random.uniform(k3, (HID_DIM, IN_DIM), jnp.float32,
                               -bound_dec, bound_dec)
    b_dec = jax.random.uniform(k4, (1, IN_DIM), jnp.float32,
                               -bound_dec, bound_dec)
    return w_enc, b_enc, w_dec, b_dec


def _reference(x, w_enc, b_enc, w_dec, b_dec):
    enc = jnp.tanh(x @ w_enc + b_enc)
    dec = jax.nn.sigmoid(enc @ w_dec + b_dec)
    return enc, dec


if __name__ == "__main__":
    key = jax.random.PRNGKey(0)
    k_x, k_x2, k_x3, k_p = jax.random.split(key, 4)
    w_enc, b_enc, w_dec, b_dec = init_params(k_p)

    # 1) Small single-tile f32 case.
    B = 8
    x = jax.random.normal(k_x, (B, IN_DIM), jnp.float32)
    encoded, decoded = simple_ae_forward(x, w_enc, b_enc, w_dec, b_dec)
    jax.block_until_ready((encoded, decoded))
    enc_ref, dec_ref = _reference(x, w_enc, b_enc, w_dec, b_dec)
    assert encoded.shape == (B, HID_DIM) and decoded.shape == (B, IN_DIM)
    assert jnp.allclose(encoded, enc_ref, atol=1e-5)
    assert jnp.allclose(decoded, dec_ref, atol=1e-5)

    # 2) Multi-tile + batch-padding case (exercises the grid / pipelining path).
    B2 = 300
    x2 = jax.random.normal(k_x2, (B2, IN_DIM), jnp.float32)
    encoded2, decoded2 = simple_ae_forward(x2, w_enc, b_enc, w_dec, b_dec,
                                           block_rows=128)
    jax.block_until_ready((encoded2, decoded2))
    enc_ref2, dec_ref2 = _reference(x2, w_enc, b_enc, w_dec, b_dec)
    assert encoded2.shape == (B2, HID_DIM) and decoded2.shape == (B2, IN_DIM)
    assert jnp.allclose(encoded2, enc_ref2, atol=1e-5)
    assert jnp.allclose(decoded2, dec_ref2, atol=1e-5)

    # 3) bf16 streaming path (halves HBM traffic; looser tolerance vs f32 ref).
    B3 = 64
    x3 = jax.random.normal(k_x3, (B3, IN_DIM), jnp.float32).astype(jnp.bfloat16)
    encoded3, decoded3 = simple_ae_forward(x3, w_enc, b_enc, w_dec, b_dec)
    jax.block_until_ready((encoded3, decoded3))
    enc_ref3, dec_ref3 = _reference(x3.astype(jnp.float32),
                                    w_enc, b_enc, w_dec, b_dec)
    assert encoded3.dtype == jnp.bfloat16 and decoded3.dtype == jnp.bfloat16
    assert jnp.allclose(encoded3.astype(jnp.float32), enc_ref3, atol=2e-2)
    assert jnp.allclose(decoded3.astype(jnp.float32), dec_ref3, atol=2e-2)

    print("KERNEL_OK")
</pallas_src>

<mosaic_0001>
module attributes {stable_mosaic.version = 11 : i64} {
  func.func @_ae_kernel(%arg0: i32, %arg1: memref<8x157xf32, #tpu.memory_space<vmem>>, %arg2: memref<157x32xf32, #tpu.memory_space<vmem>>, %arg3: memref<1x32xf32, #tpu.memory_space<vmem>>, %arg4: memref<32x157xf32, #tpu.memory_space<vmem>>, %arg5: memref<1x157xf32, #tpu.memory_space<vmem>>, %arg6: memref<8x32xf32, #tpu.memory_space<vmem>>, %arg7: memref<8x157xf32, #tpu.memory_space<vmem>>) attributes {dimension_semantics = [#tpu.dimension_semantics<parallel>], iteration_bounds = array<i64: 1>, scalar_prefetch = 0 : i64, scratch_operands = 0 : i64, tpu.core_type = #tpu.core_type<tc>, window_params = [{transform_indices = @transform_0, window_bounds = array<i64: 8, 157>}, {pipeline_mode = #tpu.pipeline_mode<synchronous>, transform_indices = @transform_1, window_bounds = array<i64: 157, 32>}, {pipeline_mode = #tpu.pipeline_mode<synchronous>, transform_indices = @transform_2, window_bounds = array<i64: 1, 32>}, {pipeline_mode = #tpu.pipeline_mode<synchronous>, transform_indices = @transform_3, window_bounds = array<i64: 32, 157>}, {pipeline_mode = #tpu.pipeline_mode<synchronous>, transform_indices = @transform_4, window_bounds = array<i64: 1, 157>}, {transform_indices = @transform_5, window_bounds = array<i64: 8, 32>}, {transform_indices = @transform_6, window_bounds = array<i64: 8, 157>}]} {
    %c0 = arith.constant 0 : index
    %c0_0 = arith.constant 0 : index
    %0 = vector.load %arg1[%c0, %c0_0] : memref<8x157xf32, #tpu.memory_space<vmem>>, vector<8x157xf32>
    %c0_1 = arith.constant 0 : index
    %c0_2 = arith.constant 0 : index
    %1 = vector.load %arg2[%c0_1, %c0_2] : memref<157x32xf32, #tpu.memory_space<vmem>>, vector<157x32xf32>
    %cst = arith.constant dense<0.000000e+00> : vector<8x32xf32>
    %2 = tpu.matmul %0, %1, %cst {dimension_numbers = #tpu.dot_dimension_numbers<[1], [0], [0], [1], [0, 0, 1, 1], [], []>} : vector<8x157xf32>, vector<157x32xf32>, vector<8x32xf32> -> vector<8x32xf32>
    %c0_3 = arith.constant 0 : index
    %c0_4 = arith.constant 0 : index
    %3 = vector.load %arg3[%c0_3, %c0_4] : memref<1x32xf32, #tpu.memory_space<vmem>>, vector<1x32xf32>
    %4 = vector.broadcast %3 : vector<1x32xf32> to vector<8x32xf32>
    %5 = arith.addf %2, %4 : vector<8x32xf32>
    %6 = math.tanh %5 : vector<8x32xf32>
    %c0_5 = arith.constant 0 : index
    %c0_6 = arith.constant 0 : index
    %7 = vector.load %arg6[%c0_5, %c0_6] : memref<8x32xf32, #tpu.memory_space<vmem>>, vector<8x32xf32>
    tpu.vector_store %arg6[%c0_5, %c0_6], %6 {strides = array<i32>} : memref<8x32xf32, #tpu.memory_space<vmem>>, vector<8x32xf32>,
    %c0_7 = arith.constant 0 : index
    %c0_8 = arith.constant 0 : index
    %8 = vector.load %arg4[%c0_7, %c0_8] : memref<32x157xf32, #tpu.memory_space<vmem>>, vector<32x157xf32>
    %cst_9 = arith.constant dense<0.000000e+00> : vector<8x157xf32>
    %9 = tpu.matmul %6, %8, %cst_9 {dimension_numbers = #tpu.dot_dimension_numbers<[1], [0], [0], [1], [0, 0, 1, 1], [], []>} : vector<8x32xf32>, vector<32x157xf32>, vector<8x157xf32> -> vector<8x157xf32>
    %c0_10 = arith.constant 0 : index
    %c0_11 = arith.constant 0 : index
    %10 = vector.load %arg5[%c0_10, %c0_11] : memref<1x157xf32, #tpu.memory_space<vmem>>, vector<1x157xf32>
    %11 = vector.broadcast %10 : vector<1x157xf32> to vector<8x157xf32>
    %12 = arith.addf %9, %11 : vector<8x157xf32>
    %13 = arith.negf %12 : vector<8x157xf32>
    %14 = math.exp %13 : vector<8x157xf32>
    %cst_12 = arith.constant 1.000000e+00 : f32
    %15 = vector.broadcast %cst_12 : f32 to vector<8x157xf32>
    %16 = arith.addf %15, %14 : vector<8x157xf32>
    %17 = arith.divf %15, %16 : vector<8x157xf32>
    %c0_13 = arith.constant 0 : index
    %c0_14 = arith.constant 0 : index
    %18 = vector.load %arg7[%c0_13, %c0_14] : memref<8x157xf32, #tpu.memory_space<vmem>>, vector<8x157xf32>
    tpu.vector_store %arg7[%c0_13, %c0_14], %17 {strides = array<i32>} : memref<8x157xf32, #tpu.memory_space<vmem>>, vector<8x157xf32>,
    return
  }
  func.func @transform_0(%arg0: i32) -> (i32, i32) {
    %c0_i32 = arith.constant 0 : i32
    %c0_i32_0 = arith.constant 0 : i32
    return %arg0, %c0_i32 : i32, i32
  }
  func.func @transform_1(%arg0: i32) -> (i32, i32) {
    %c0_i32 = arith.constant 0 : i32
    %c0_i32_0 = arith.constant 0 : i32
    %c0_i32_1 = arith.constant 0 : i32
    return %c0_i32, %c0_i32_0 : i32, i32
  }
  func.func @transform_2(%arg0: i32) -> (i32, i32) {
    %c0_i32 = arith.constant 0 : i32
    %c0_i32_0 = arith.constant 0 : i32
    %c0_i32_1 = arith.constant 0 : i32
    return %c0_i32, %c0_i32_0 : i32, i32
  }
  func.func @transform_3(%arg0: i32) -> (i32, i32) {
    %c0_i32 = arith.constant 0 : i32
    %c0_i32_0 = arith.constant 0 : i32
    %c0_i32_1 = arith.constant 0 : i32
    return %c0_i32, %c0_i32_0 : i32, i32
  }
  func.func @transform_4(%arg0: i32) -> (i32, i32) {
    %c0_i32 = arith.constant 0 : i32
    %c0_i32_0 = arith.constant 0 : i32
    %c0_i32_1 = arith.constant 0 : i32
    return %c0_i32, %c0_i32_0 : i32, i32
  }
  func.func @transform_5(%arg0: i32) -> (i32, i32) {
    %c0_i32 = arith.constant 0 : i32
    %c0_i32_0 = arith.constant 0 : i32
    return %arg0, %c0_i32 : i32, i32
  }
  func.func @transform_6(%arg0: i32) -> (i32, i32) {
    %c0_i32 = arith.constant 0 : i32
    %c0_i32_0 = arith.constant 0 : i32
    return %arg0, %c0_i32 : i32, i32
  }
}

</mosaic_0001>

<bundles_post_ra>
// kernel: simple_ae_forward.1
= control target key start
LH: loop header
LB: loop body
LE: loop exit
PB: predicated region body
PF: predicated region fallthrough
CT: control target
= control target key end

     0   :  { %12 = vsyncpa [#allocation3], 0  ;;  %v378_v3 = vmov 0.0|0.0   ;;  %vm53_vm0 = vcmask 236544   ;;  %s540_s0 = inlined_call_operand.vmem [shape: f32[8,157], index: 0, kind: input, shape index: {}]   ;;  %s541_s1 = inlined_call_operand.vmem [shape: f32[157,32], index: 1, kind: input, shape index: {}]   ;;  %s542_s2 = inlined_call_operand.vmem [shape: f32[1,32], index: 2, kind: input, shape index: {}]   ;;  %s543_s3 = inlined_call_operand.vmem [shape: f32[32,157], index: 3, kind: input, shape index: {}]   ;;  %s544_s4 = inlined_call_operand.vmem [shape: f32[1,157], index: 4, kind: input, shape index: {}]   ;;  %s545_s5 = inlined_call_operand.hbm [shape: f32[8,32], index: 5, kind: output, shape index: {0}]   ;;  %s546_s6 = inlined_call_operand.hbm [shape: f32[8,157], index: 6, kind: output, shape index: {1}]  }
   0x1   :  { %v26_v0 = vld [vmem:[%s541_s1] sm:$0xff]  ;;  %v27_v1 = vld [vmem:[%s541_s1 + $0x8] sm:$0xff]  ;;  %v28_v2 = vld [vmem:[%s541_s1 + $0x10] sm:$0xff]  ;;  %276 = vmatprep.subr.bf16.mxu0 %v378_v3 }
   0x2   :  { %v277_v4 = vpack.c.bf16 %v27_v1, %v26_v0  ;;  %v29_v5 = vld [vmem:[%s541_s1 + $0x18] sm:$0xff]  ;;  %v30_v7 = vld [vmem:[%s541_s1 + $0x20] sm:$0xff]  ;;  %v31_v8 = vld [vmem:[%s541_s1 + $0x28] sm:$0xff] }
   0x3   :  { %v280_v6 = vpack.c.bf16 %v29_v5, %v28_v2  ;;  %v283_v9 = vpack.c.bf16 %v31_v8, %v30_v7  ;;  %v25_v10 = vld [vmem:[%s540_s0 + $0x8] sm:$0xff]  ;;  %v32_v11 = vld [vmem:[%s541_s1 + $0x30] sm:$0xff]  ;;  %v33_v12 = vld [vmem:[%s541_s1 + $0x38] sm:$0xff] }
   0x4   :  { %278 = vmatpush1.bf16.msra.mxu0 %v277_v4  ;;  %272 = vmatprep.mubr.msk.f32.mxu0 %vm53_vm0, %v25_v10 }
   0x5   :  { %279 = vmatprep.subr.bf16.mxu0 %v378_v3 }
   0x8   :  { %281 = vmatpush1.bf16.msra.mxu0 %v280_v6 }
   0x9   :  { %282 = vmatprep.subr.bf16.mxu0 %v378_v3 }
   0xa   :  { %13 = vsyncpa [#allocation5], 0  ;;  %v286_v13 = vpack.c.bf16 %v33_v12, %v32_v11  ;;  %v34_v14 = vld [vmem:[%s541_s1 + $0x40] sm:$0xff]  ;;  %v35_v15 = vld [vmem:[%s541_s1 + $0x48] sm:$0xff]  ;;  %vm57_vm1 = vcmask 1044480   ;;  %vm379_vm2 = vmmov 1  }
   0xb   :  { %v289_v16 = vpack.c.bf16 %v35_v15, %v34_v14  ;;  %v36_v17 = vld [vmem:[%s541_s1 + $0x50] sm:$0xff]  ;;  %v37_v18 = vld [vmem:[%s541_s1 + $0x58] sm:$0xff]  ;;  %v38_v20 = vld [vmem:[%s541_s1 + $0x60] sm:$0xff]  ;;  %v380_v40 = vmov 0.0   ;;  %vm132_vm4 = vcmask 261120   ;;  %s381_s9 = smov [#allocation2]  }
   0xc   :  { %284 = vmatpush1.bf16.msra.mxu0 %v283_v9  ;;  %v292_v19 = vpack.c.bf16 %v37_v18, %v36_v17  ;;  %v39_v21 = vld [vmem:[%s541_s1 + $0x68] sm:$0xff]  ;;  %v40_v23 = vld [vmem:[%s541_s1 + $0x70] sm:$0xff]  ;;  %v41_v24 = vld [vmem:[%s541_s1 + $0x78] sm:$0xff]  ;;  %221 = vmatprep.mubr.f32.mxu1 %v380_v40  ;;  %s248_s10 = sshll.u32 %s381_s9, 4  ;;  %s249_s10 = int_to_ptr.vmem [resolvable:$true] %s248_s10 }
   0xd   :  { %285 = vmatprep.subr.bf16.mxu0 %v378_v3  ;;  %v295_v22 = vpack.c.bf16 %v39_v21, %v38_v20  ;;  %v298_v25 = vpack.c.bf16 %v41_v24, %v40_v23  ;;  %v42_v26 = vld [vmem:[%s541_s1 + $0x80] sm:$0xff]  ;;  %v43_v27 = vld [vmem:[%s541_s1 + $0x88] sm:$0xff]  ;;  %v44_v29 = vld [vmem:[%s541_s1 + $0x90] sm:$0xff]  ;;  %p335_p1 = scmp.lt.s32.totalorder %s249_s10, %s249_s10 }
   0xe   :  { %v301_v28 = vpack.c.bf16 %v43_v27, %v42_v26  ;;  %v45_v30 = vld [vmem:[%s541_s1 + $0x98] sm:$0x1f]  ;;  %vm305_vm3 = vmpackc.low %vm57_vm1, %vm379_vm2  ;;  %v24_v32 = vld [vmem:[%s540_s0] sm:$0xff] }
   0xf   :  { %v304_v31 = vpack.c.bf16 %v45_v30, %v44_v29  ;;  %v135_v33 = vld [vmem:[%s543_s3 + $0x8] sm:$0xff]  ;;  %v137_v34 = vld [vmem:[%s543_s3 + $0x18] sm:$0xff]  ;;  %v134_v35 = vld [vmem:[%s543_s3] sm:$0xff] }
  0x10   :  { %287 = vmatpush1.bf16.msra.mxu0 %v286_v13  ;;  %v307_v36 = vpack.c.bf16 %v137_v34, %v135_v33  ;;  %v136_v37 = vld [vmem:[%s543_s3 + $0x10] sm:$0xff]  ;;  %v139_v38 = vld [vmem:[%s543_s3 + $0x28] sm:$0xff]  ;;  %v141_v39 = vld [vmem:[%s543_s3 + $0x38] sm:$0xff] }
  0x11   :  { %288 = vmatprep.subr.bf16.mxu0 %v378_v3  ;;  %v309_v41 = vpack.c.bf16 %v136_v37, %v134_v35  ;;  %v311_v42 = vpack.c.bf16 %v141_v39, %v139_v38  ;;  %v138_v43 = vld [vmem:[%s543_s3 + $0x20] sm:$0xff]  ;;  %v140_v44 = vld [vmem:[%s543_s3 + $0x30] sm:$0xff]  ;;  %s330_s3 = scalar_lea.vmem %s249_s10, 128 }
  0x12   :  { %308 = vmatprep.subr.bf16.mxu1 %v307_v36  ;;  %v313_v45 = vpack.c.bf16 %v140_v44, %v138_v43  ;;  %v270_v46 = vld [vmem:[%s542_s2] ss:$0 sm:$0xff]  ;;  %p331_p0 = scmp.ne.s32.totalorder %s249_s10, %s330_s3  ;;  %p336_p2 = scmp.lt.s32.totalorder %s330_s3, %s330_s3 }
  0x13   :  { %310 = vmatpush1.bf16.msra.mxu1 %v309_v41 }
  0x14   :  { %290 = vmatpush1.bf16.msra.mxu0 %v289_v16  ;;  %312 = vmatprep.subr.bf16.mxu1 %v311_v42  ;;  %p337_p3 = por %p336_p2, %p335_p1 }
  0x15   :  { %291 = vmatprep.subr.bf16.mxu0 %v378_v3 }
  0x16   :  { %p338_p4 = pnand %p337_p3, %p331_p0 }
  0x17   :  { %314 = vmatpush1.bf16.msra.mxu1 %v313_v45 }
  0x18   :  { %293 = vmatpush1.bf16.msra.mxu0 %v292_v19 }
  0x19   :  { %294 = vmatprep.subr.bf16.mxu0 %v378_v3 }
  0x1c   :  { %296 = vmatpush1.bf16.msra.mxu0 %v295_v22 }
  0x1d   :  { %297 = vmatprep.subr.bf16.mxu0 %v378_v3 }
  0x20   :  { %299 = vmatpush1.bf16.msra.mxu0 %v298_v25 }
  0x21   :  { %300 = vmatprep.subr.bf16.mxu0 %v378_v3 }
  0x24   :  { %302 = vmatpush1.bf16.msra.mxu0 %v301_v28 }
  0x25   :  { %303 = vmatprep.subr.bf16.mxu0 %v378_v3 }
  0x28   :  { %306 = vmatpush1.bf16.msk.msra.mxu0 %vm305_vm3, %v304_v31 }
  0x2b   :  { %126 = vmatmul.mubr.f32.vlgmr.msra.gmra.mrb[0].mxu0 %v24_v32 }
  0xfe   :  { %v127_v47 = vpop.f32.mrb[0].mxu0 }
  0xff   :  { %v128_v48 = vadd.f32 %v270_v46, %v127_v47  ;;  %v129_v49 = vpop.f32.mrb[1].mxu0 }
 0x101   :  { %320 = vtanh.f32 %v128_v48 }
 0x10b   :  { %v321_v50 = vpop.eup %320 }
 0x10c   :  { %273 = vmatmul.mubr.msk.f32.vlgmr.msra.gmra.mrb[0].mxu1 %vm132_vm4, %v321_v50  ;;  %133 = vst.msk [vmem:[#allocation2] sm:$0xff] %vm132_vm4, %v321_v50 }
 0x10d   :  { %341 = shalt.err (!%p338_p4)
}
 0x10e   :  { %s342_s12 = scalar_lea.hbm %s545_s5, 128 }
 0x10f   :  { %p343_p5 = scmp.ne.s32.totalorder %s545_s5, %s342_s12  ;;  %p346_p6 = scmp.lt.u32.totalorder %s342_s12, %s545_s5 }
 0x111   :  { %p348_p7 = pnand %p346_p6, %p343_p5 }
 0x113   :  { %351 = shalt.err (!%p348_p7)
}
 0x114   :  { %251 = dma.vmem_to_hbm [thread:$0]  %s249_s10, 128, %s545_s5, [#allocation3]   ;;  %v144_v51 = vlaneseq  ;;  %v142_v54 = vld [vmem:[%s544_s4] sm:$0x3] }
 0x115   :  { %s382_s5 = smov [#allocation4]  }
 0x116   :  { %v145_v52 = vshrl.u32 %v144_v51, 7  ;;  %s258_s1 = sshll.u32 %s382_s5, 4  ;;  %s259_s1 = int_to_ptr.vmem [resolvable:$true] %s258_s1 }
 0x117   :  { %s352_s4 = scalar_lea.vmem %s259_s1, 256  ;;  %p357_p9 = scmp.lt.s32.totalorder %s259_s1, %s259_s1 }
 0x118   :  { %v146_v53 = vsub.s32 0, %v145_v52  ;;  %v150_v55 = vsub.s32 1, %v145_v52  ;;  %p353_p8 = scmp.ne.s32.totalorder %s259_s1, %s352_s4  ;;  %p358_p10 = scmp.lt.s32.totalorder %s352_s4, %s352_s4 }
 0x11a   :  { %v147_v56 = vrot.slane %v142_v54, %v146_v53  ;;  %v151_v57 = vrot.slane %v142_v54, %v150_v55  ;;  %p359_p11 = por %p358_p10, %p357_p9 }
 0x11c   :  { %p360_p12 = pnand %p359_p11, %p353_p8 }
 0x1df   :  { %v223_v58 = vpop.f32.mrb[0].mxu1 }
 0x1e0   :  { %v224_v59 = vadd.f32 %v223_v58, %v147_v56  ;;  %v225_v60 = vpop.f32.mrb[1].mxu1 }
 0x1e1   :  { %v226_v61 = vadd.f32 %v225_v60, %v151_v57 }
 0x1e2   :  { %v274_v62 = vmul.f32 -1.442695, %v224_v59 }
 0x1e3   :  { %v275_v63 = vmul.f32 -1.442695, %v226_v61 }
 0x1e4   :  { %322 = vpow2.f32 %v274_v62 }
 0x1e5   :  { %324 = vpow2.f32 %v275_v63 }
 0x1ee   :  { %v323_v0 = vpop.eup %322 }
 0x1ef   :  { %v325_v1 = vpop.eup %324  ;;  %v234_v2 = vadd.f32 1.0, %v323_v0 }
 0x1f0   :  { %v235_v3 = vadd.f32 1.0, %v325_v1 }
 0x1f1   :  { %326 = vrcp.f32 %v234_v2 }
 0x1f2   :  { %328 = vrcp.f32 %v235_v3 }
 0x1fb   :  { %v327_v4 = vpop.eup %326 }
 0x1fc   :  { %v329_v5 = vpop.eup %328  ;;  %240 = vst [vmem:[#allocation4] sm:$0xff] %v327_v4 }
 0x1fd   :  { %241 = vst.msk [vmem:[#allocation4 + $0x8] sm:$0xff] %vm53_vm0, %v329_v5 }
 0x1fe   :  { %363 = shalt.err (!%p360_p12)
}
 0x1ff   :  { %s364_s23 = scalar_lea.hbm %s546_s6, 256 }
 0x200   :  { %p365_p13 = scmp.ne.s32.totalorder %s546_s6, %s364_s23  ;;  %p368_p0 = scmp.lt.u32.totalorder %s364_s23, %s546_s6 }
 0x202   :  { %p370_p1 = pnand %p368_p0, %p365_p13 }
 0x204   :  { %373 = shalt.err (!%p370_p1)
}
 0x205   :  { %261 = dma.vmem_to_hbm [thread:$0]  %s259_s1, 256, %s546_s6, [#allocation5]  }
 0x206   :  { %374 = dma.done.wait [#allocation3], 128  }
 0x207   :  { %375 = vsyncadd [#allocation3], 4294967168 }
 0x208   :  { %376 = dma.done.wait [#allocation5], 256  }
 0x209   :  { %377 = vsyncadd [#allocation5], 4294967040 }
 0x20a   :  { %268 = vsyncpa [#allocation3], 1 }
 0x20b   :  { %269 = vsyncpa [#allocation5], 1 }

</bundles_post_ra>
